<compile_context>
chip_gen: v6e
topology: v6e:2x2x1
jax: 0.10.0
libtpu: 0.0.40
codegen_flags: <defaults>
</compile_context>

<pallas_src>
import functools

import jax
import jax.numpy as jnp
from jax.experimental import pallas as pl
from jax.experimental.pallas import tpu as pltpu

_LANE = 128
_SUBLANE = 8


def _round_up(v, m):
    return (v + m - 1) // m * m


def mlp_logsoftmax_kernel(*refs, apply_mask):
    if apply_mask:
        x_ref, w1_ref, b1_ref, w2_ref, b2_ref, mask_ref, o_ref = refs
    else:
        x_ref, w1_ref, b1_ref, w2_ref, b2_ref, o_ref = refs

    # fc1 + ReLU  (padded hidden lanes: w1/b1 padding is zero -> ReLU(0) = 0).
    h = jnp.dot(x_ref[...], w1_ref[...], preferred_element_type=jnp.float32)
    h = jnp.maximum(h + b1_ref[...], 0.0)

    # fc2 + ReLU  (padded w2 rows are zero -> no contribution).  Cast the
    # intermediate to the matmul dtype (bf16 on v6e/v7x); no-op when f32.
    z = jnp.dot(h.astype(w2_ref.dtype), w2_ref[...],
                preferred_element_type=jnp.float32)
    z = jnp.maximum(z + b2_ref[...], 0.0)

    # Additive padding mask: 0 on real output lanes, -1e30 on padded lanes
    # (padded lanes can't win the row max; exp underflows to exactly 0).
    # Statically skipped when O is already a multiple of 128.
    if apply_mask:
        z = z + mask_ref[...]

    # log_softmax over the feature axis (F.log_softmax on 2-D input -> dim=1).
    m = jnp.max(z, axis=-1, keepdims=True)
    s = z - m
    lse = jnp.log(jnp.sum(jnp.exp(s), axis=-1, keepdims=True))
    o_ref[...] = (s - lse).astype(o_ref.dtype)


def neuron_forward(x, w1, b1, w2, b2, *, batch_tile=512,
                   matmul_dtype=jnp.float32):
    """x: [B, F]; w1: [F, H]; b1: [1, H]; w2: [H, O]; b2: [1, O]."""
    B, F = x.shape
    H = w1.shape[1]
    O = w2.shape[1]

    # Lane-dense H / O so every VPU/XLU op and the output store use full
    # 128-lane vregs (no vst.msk partial stores).  F stays un-padded.
    Hp = _round_up(H, _LANE)
    Op = _round_up(O, _LANE)

    # Batch tile: sublane-aligned, and capped so the grid has >= 2 steps
    # whenever possible (keeps v7x's second TensorCore busy).
    Bp8 = _round_up(B, _SUBLANE)
    tile_b = min(int(batch_tile), Bp8)
    if Bp8 >= 2 * _SUBLANE:
        tile_b = min(tile_b, _round_up(pl.cdiv(Bp8, 2), _SUBLANE))
    tile_b = _round_up(max(tile_b, _SUBLANE), _SUBLANE)
    Bp = _round_up(B, tile_b)

    # Zero-pad in the wrapper; padded rows/lanes are inert (see kernel).
    xp = jnp.pad(x, ((0, Bp - B), (0, 0)))
    w1p = jnp.pad(w1, ((0, 0), (0, Hp - H)))
    b1p = jnp.pad(b1, ((0, 0), (0, Hp - H)))
    w2p = jnp.pad(w2, ((0, Hp - H), (0, Op - O)))
    b2p = jnp.pad(b2, ((0, 0), (0, Op - O)))

    cast_matmul = jnp.dtype(matmul_dtype) != jnp.dtype(jnp.float32)
    if cast_matmul:
        # Only the MXU operands go low-precision; biases / mask / softmax f32.
        xp = xp.astype(matmul_dtype)
        w1p = w1p.astype(matmul_dtype)
        w2p = w2p.astype(matmul_dtype)

    apply_mask = Op > O
    operands = (xp, w1p, b1p, w2p, b2p)
    if apply_mask:
        mask_row = jnp.where(jnp.arange(Op) < O, 0.0, -1e30)
        operands = operands + (mask_row.astype(jnp.float32).reshape(1, Op),)

    kernel = functools.partial(mlp_logsoftmax_kernel, apply_mask=apply_mask)

    # Explicit VMEM budget: single-buffered resident weights (+2x headroom in
    # case the fallback path double-buffers them) plus double-buffered x/out
    # streams, clamped to ~3/4 of the chip's physical VMEM.
    mm_bytes = jnp.dtype(matmul_dtype).itemsize
    resident_bytes = (F * Hp + Hp * Op) * mm_bytes + (Hp + 3 * Op) * 4
    stream_bytes = 2 * tile_b * (F * mm_bytes + Op * 4)
    needed = 2 * resident_bytes + stream_bytes + (2 << 20)
    try:
        vmem_cap = int(pltpu.get_tpu_info().vmem_capacity_bytes)
    except Exception:
        vmem_cap = 64 << 20  # conservative: v7x per-core VMEM
    vmem_limit = int(min(max(2 * needed, 32 << 20), (vmem_cap * 3) // 4))
    vmem_limit = max(vmem_limit, int(needed))

    def _call(resident_pipeline_mode):
        def resident(shape):
            if resident_pipeline_mode is None:
                return pl.BlockSpec(shape, lambda i: (0, 0))
            return pl.BlockSpec(shape, lambda i: (0, 0),
                                pipeline_mode=resident_pipeline_mode)

        in_specs = [
            pl.BlockSpec((tile_b, F), lambda i: (i, 0)),  # x streamed
            resident((F, Hp)),
            resident((1, Hp)),
            resident((Hp, Op)),
            resident((1, Op)),
        ]
        if apply_mask:
            in_specs.append(resident((1, Op)))

        return pl.pallas_call(
            kernel,
            out_shape=jax.ShapeDtypeStruct((Bp, Op), jnp.float32),
            grid=(Bp // tile_b,),
            in_specs=in_specs,
            out_specs=pl.BlockSpec((tile_b, Op), lambda i: (i, 0)),
            compiler_params=pltpu.CompilerParams(
                dimension_semantics=("parallel",),
                vmem_limit_bytes=vmem_limit),
        )(*operands)

    try:
        out = _call(pl.Buffered(1))  # single-buffer the resident weights
    except Exception:
        # Fallback if this jax build rejects pipeline_mode single-buffering.
        out = _call(None)

    return out[:B, :O]


def init_params(key, ip_nodes, lyr2_nodes, op_nodes):
    # Deterministic init mimicking nn.Linear's uniform(-1/sqrt(fan_in), ...).
    k1, k2, k3, k4 = jax.random.split(key, 4)
    lim1 = 1.0 / jnp.sqrt(ip_nodes)
    lim2 = 1.0 / jnp.sqrt(lyr2_nodes)
    # Stored as [in, out] (transpose of PyTorch's [out, in]) so x @ W works.
    w1 = jax.random.uniform(k1, (ip_nodes, lyr2_nodes), jnp.float32, -lim1, lim1)
    b1 = jax.random.uniform(k2, (1, lyr2_nodes), jnp.float32, -lim1, lim1)
    w2 = jax.random.uniform(k3, (lyr2_nodes, op_nodes), jnp.float32, -lim2, lim2)
    b2 = jax.random.uniform(k4, (1, op_nodes), jnp.float32, -lim2, lim2)
    return w1, b1, w2, b2


if __name__ == "__main__":
    ip_nodes, lyr2_nodes, op_nodes = 32, 64, 16
    batch = 13  # non-multiple-of-8 batch -> exercises padding and a 2-step grid

    key = jax.random.PRNGKey(0)
    kx, kp = jax.random.split(key)
    x = jax.random.normal(kx, (batch, ip_nodes), jnp.float32)
    w1, b1, w2, b2 = init_params(kp, ip_nodes, lyr2_nodes, op_nodes)

    out = neuron_forward(x, w1, b1, w2, b2)
    jax.block_until_ready(out)

    # Plain-JAX reference of the same forward pass.
    h_ref = jnp.maximum(x @ w1 + b1, 0.0)
    z_ref = jnp.maximum(h_ref @ w2 + b2, 0.0)
    ref = jax.nn.log_softmax(z_ref, axis=-1)
    assert out.shape == (batch, op_nodes)
    assert jnp.allclose(out, ref, atol=1e-5), "f32 mismatch vs reference"

    # bf16 matmul-operand path (the v6e/v7x perf configuration); elementwise
    # math, the mask and the log_softmax stay f32, only MXU rounding differs.
    out_bf16 = neuron_forward(x, w1, b1, w2, b2, matmul_dtype=jnp.bfloat16)
    jax.block_until_ready(out_bf16)
    assert bool(jnp.all(jnp.isfinite(out_bf16)))
    assert jnp.allclose(out_bf16, ref, atol=3e-1), "bf16 mismatch vs reference"

    print("KERNEL_OK")
</pallas_src>

<mosaic_0001>
module attributes {stable_mosaic.version = 11 : i64} {
  func.func @mlp_logsoftmax_kernel(%arg0: i32, %arg1: memref<8x32xf32, #tpu.memory_space<vmem>>, %arg2: memref<32x128xf32, #tpu.memory_space<vmem>>, %arg3: memref<1x128xf32, #tpu.memory_space<vmem>>, %arg4: memref<128x128xf32, #tpu.memory_space<vmem>>, %arg5: memref<1x128xf32, #tpu.memory_space<vmem>>, %arg6: memref<1x128xf32, #tpu.memory_space<vmem>>, %arg7: memref<8x128xf32, #tpu.memory_space<vmem>>) attributes {dimension_semantics = [#tpu.dimension_semantics<parallel>], iteration_bounds = array<i64: 2>, scalar_prefetch = 0 : i64, scratch_operands = 0 : i64, tpu.core_type = #tpu.core_type<tc>, window_params = [{transform_indices = @transform_0, window_bounds = array<i64: 8, 32>}, {pipeline_mode = #tpu.pipeline_mode<synchronous>, transform_indices = @transform_1, window_bounds = array<i64: 32, 128>}, {pipeline_mode = #tpu.pipeline_mode<synchronous>, transform_indices = @transform_2, window_bounds = array<i64: 1, 128>}, {pipeline_mode = #tpu.pipeline_mode<synchronous>, transform_indices = @transform_3, window_bounds = array<i64: 128, 128>}, {pipeline_mode = #tpu.pipeline_mode<synchronous>, transform_indices = @transform_4, window_bounds = array<i64: 1, 128>}, {pipeline_mode = #tpu.pipeline_mode<synchronous>, transform_indices = @transform_5, window_bounds = array<i64: 1, 128>}, {transform_indices = @transform_6, window_bounds = array<i64: 8, 128>}]} {
    %c0 = arith.constant 0 : index
    %c0_0 = arith.constant 0 : index
    %0 = vector.load %arg1[%c0, %c0_0] : memref<8x32xf32, #tpu.memory_space<vmem>>, vector<8x32xf32>
    %c0_1 = arith.constant 0 : index
    %c0_2 = arith.constant 0 : index
    %1 = vector.load %arg2[%c0_1, %c0_2] : memref<32x128xf32, #tpu.memory_space<vmem>>, vector<32x128xf32>
    %cst = arith.constant dense<0.000000e+00> : vector<8x128xf32>
    %2 = tpu.matmul %0, %1, %cst {dimension_numbers = #tpu.dot_dimension_numbers<[1], [0], [0], [1], [0, 0, 1, 1], [], []>} : vector<8x32xf32>, vector<32x128xf32>, vector<8x128xf32> -> vector<8x128xf32>
    %c0_3 = arith.constant 0 : index
    %c0_4 = arith.constant 0 : index
    %3 = vector.load %arg3[%c0_3, %c0_4] : memref<1x128xf32, #tpu.memory_space<vmem>>, vector<1x128xf32>
    %4 = vector.broadcast %3 : vector<1x128xf32> to vector<8x128xf32>
    %5 = arith.addf %2, %4 : vector<8x128xf32>
    %cst_5 = arith.constant 0.000000e+00 : f32
    %6 = vector.broadcast %cst_5 : f32 to vector<8x128xf32>
    %7 = arith.maximumf %5, %6 : vector<8x128xf32>
    %c0_6 = arith.constant 0 : index
    %c0_7 = arith.constant 0 : index
    %8 = vector.load %arg4[%c0_6, %c0_7] : memref<128x128xf32, #tpu.memory_space<vmem>>, vector<128x128xf32>
    %cst_8 = arith.constant dense<0.000000e+00> : vector<8x128xf32>
    %9 = tpu.matmul %7, %8, %cst_8 {dimension_numbers = #tpu.dot_dimension_numbers<[1], [0], [0], [1], [0, 0, 1, 1], [], []>} : vector<8x128xf32>, vector<128x128xf32>, vector<8x128xf32> -> vector<8x128xf32>
    %c0_9 = arith.constant 0 : index
    %c0_10 = arith.constant 0 : index
    %10 = vector.load %arg5[%c0_9, %c0_10] : memref<1x128xf32, #tpu.memory_space<vmem>>, vector<1x128xf32>
    %11 = vector.broadcast %10 : vector<1x128xf32> to vector<8x128xf32>
    %12 = arith.addf %9, %11 : vector<8x128xf32>
    %cst_11 = arith.constant 0.000000e+00 : f32
    %13 = vector.broadcast %cst_11 : f32 to vector<8x128xf32>
    %14 = arith.maximumf %12, %13 : vector<8x128xf32>
    %c0_12 = arith.constant 0 : index
    %c0_13 = arith.constant 0 : index
    %15 = vector.load %arg6[%c0_12, %c0_13] : memref<1x128xf32, #tpu.memory_space<vmem>>, vector<1x128xf32>
    %16 = vector.broadcast %15 : vector<1x128xf32> to vector<8x128xf32>
    %17 = arith.addf %14, %16 : vector<8x128xf32>
    %cst_14 = arith.constant dense<0xFF800000> : vector<8xf32>
    %18 = vector.multi_reduction <maximumf>, %17, %cst_14 [1] : vector<8x128xf32> to vector<8xf32>
    %19 = vector.shape_cast %18 : vector<8xf32> to vector<8x1xf32>
    %20 = vector.broadcast %19 : vector<8x1xf32> to vector<8x128xf32>
    %21 = arith.subf %17, %20 : vector<8x128xf32>
    %22 = math.exp %21 : vector<8x128xf32>
    %cst_15 = arith.constant dense<0.000000e+00> : vector<8xf32>
    %23 = vector.multi_reduction <add>, %22, %cst_15 [1] : vector<8x128xf32> to vector<8xf32>
    %24 = vector.shape_cast %23 : vector<8xf32> to vector<8x1xf32>
    %25 = math.log %24 : vector<8x1xf32>
    %26 = vector.broadcast %25 : vector<8x1xf32> to vector<8x128xf32>
    %27 = arith.subf %21, %26 : vector<8x128xf32>
    %c0_16 = arith.constant 0 : index
    %c0_17 = arith.constant 0 : index
    %28 = vector.load %arg7[%c0_16, %c0_17] : memref<8x128xf32, #tpu.memory_space<vmem>>, vector<8x128xf32>
    tpu.vector_store %arg7[%c0_16, %c0_17], %27 {strides = array<i32>} : memref<8x128xf32, #tpu.memory_space<vmem>>, vector<8x128xf32>,
    return
  }
  func.func @transform_0(%arg0: i32) -> (i32, i32) {
    %c0_i32 = arith.constant 0 : i32
    %c0_i32_0 = arith.constant 0 : i32
    return %arg0, %c0_i32 : i32, i32
  }
  func.func @transform_1(%arg0: i32) -> (i32, i32) {
    %c0_i32 = arith.constant 0 : i32
    %c0_i32_0 = arith.constant 0 : i32
    %c0_i32_1 = arith.constant 0 : i32
    return %c0_i32, %c0_i32_0 : i32, i32
  }
  func.func @transform_2(%arg0: i32) -> (i32, i32) {
    %c0_i32 = arith.constant 0 : i32
    %c0_i32_0 = arith.constant 0 : i32
    %c0_i32_1 = arith.constant 0 : i32
    return %c0_i32, %c0_i32_0 : i32, i32
  }
  func.func @transform_3(%arg0: i32) -> (i32, i32) {
    %c0_i32 = arith.constant 0 : i32
    %c0_i32_0 = arith.constant 0 : i32
    %c0_i32_1 = arith.constant 0 : i32
    return %c0_i32, %c0_i32_0 : i32, i32
  }
  func.func @transform_4(%arg0: i32) -> (i32, i32) {
    %c0_i32 = arith.constant 0 : i32
    %c0_i32_0 = arith.constant 0 : i32
    %c0_i32_1 = arith.constant 0 : i32
    return %c0_i32, %c0_i32_0 : i32, i32
  }
  func.func @transform_5(%arg0: i32) -> (i32, i32) {
    %c0_i32 = arith.constant 0 : i32
    %c0_i32_0 = arith.constant 0 : i32
    %c0_i32_1 = arith.constant 0 : i32
    return %c0_i32, %c0_i32_0 : i32, i32
  }
  func.func @transform_6(%arg0: i32) -> (i32, i32) {
    %c0_i32 = arith.constant 0 : i32
    %c0_i32_0 = arith.constant 0 : i32
    return %arg0, %c0_i32 : i32, i32
  }
}

module attributes {stable_mosaic.version = 11 : i64} {
  func.func @mlp_logsoftmax_kernel(%arg0: i32, %arg1: memref<8x32xf32, #tpu.memory_space<vmem>>, %arg2: memref<32x128xf32, #tpu.memory_space<vmem>>, %arg3: memref<1x128xf32, #tpu.memory_space<vmem>>, %arg4: memref<128x128xf32, #tpu.memory_space<vmem>>, %arg5: memref<1x128xf32, #tpu.memory_space<vmem>>, %arg6: memref<1x128xf32, #tpu.memory_space<vmem>>, %arg7: memref<8x128xf32, #tpu.memory_space<vmem>>) attributes {dimension_semantics = [#tpu.dimension_semantics<parallel>], iteration_bounds = array<i64: 2>, scalar_prefetch = 0 : i64, scratch_operands = 0 : i64, tpu.core_type = #tpu.core_type<tc>, window_params = [{transform_indices = @transform_0, window_bounds = array<i64: 8, 32>}, {pipeline_mode = #tpu.pipeline_mode<synchronous>, transform_indices = @transform_1, window_bounds = array<i64: 32, 128>}, {pipeline_mode = #tpu.pipeline_mode<synchronous>, transform_indices = @transform_2, window_bounds = array<i64: 1, 128>}, {pipeline_mode = #tpu.pipeline_mode<synchronous>, transform_indices = @transform_3, window_bounds = array<i64: 128, 128>}, {pipeline_mode = #tpu.pipeline_mode<synchronous>, transform_indices = @transform_4, window_bounds = array<i64: 1, 128>}, {pipeline_mode = #tpu.pipeline_mode<synchronous>, transform_indices = @transform_5, window_bounds = array<i64: 1, 128>}, {transform_indices = @transform_6, window_bounds = array<i64: 8, 128>}]} {
    %c0 = arith.constant 0 : index
    %c0_0 = arith.constant 0 : index
    %0 = vector.load %arg1[%c0, %c0_0] : memref<8x32xf32, #tpu.memory_space<vmem>>, vector<8x32xf32>
    %c0_1 = arith.constant 0 : index
    %c0_2 = arith.constant 0 : index
    %1 = vector.load %arg2[%c0_1, %c0_2] : memref<32x128xf32, #tpu.memory_space<vmem>>, vector<32x128xf32>
    %cst = arith.constant dense<0.000000e+00> : vector<8x128xf32>
    %2 = tpu.matmul %0, %1, %cst {dimension_numbers = #tpu.dot_dimension_numbers<[1], [0], [0], [1], [0, 0, 1, 1], [], []>} : vector<8x32xf32>, vector<32x128xf32>, vector<8x128xf32> -> vector<8x128xf32>
    %c0_3 = arith.constant 0 : index
    %c0_4 = arith.constant 0 : index
    %3 = vector.load %arg3[%c0_3, %c0_4] : memref<1x128xf32, #tpu.memory_space<vmem>>, vector<1x128xf32>
    %4 = vector.broadcast %3 : vector<1x128xf32> to vector<8x128xf32>
    %5 = arith.addf %2, %4 : vector<8x128xf32>
    %cst_5 = arith.constant 0.000000e+00 : f32
    %6 = vector.broadcast %cst_5 : f32 to vector<8x128xf32>
    %7 = arith.maximumf %5, %6 : vector<8x128xf32>
    %c0_6 = arith.constant 0 : index
    %c0_7 = arith.constant 0 : index
    %8 = vector.load %arg4[%c0_6, %c0_7] : memref<128x128xf32, #tpu.memory_space<vmem>>, vector<128x128xf32>
    %cst_8 = arith.constant dense<0.000000e+00> : vector<8x128xf32>
    %9 = tpu.matmul %7, %8, %cst_8 {dimension_numbers = #tpu.dot_dimension_numbers<[1], [0], [0], [1], [0, 0, 1, 1], [], []>} : vector<8x128xf32>, vector<128x128xf32>, vector<8x128xf32> -> vector<8x128xf32>
    %c0_9 = arith.constant 0 : index
    %c0_10 = arith.constant 0 : index
    %10 = vector.load %arg5[%c0_9, %c0_10] : memref<1x128xf32, #tpu.memory_space<vmem>>, vector<1x128xf32>
    %11 = vector.broadcast %10 : vector<1x128xf32> to vector<8x128xf32>
    %12 = arith.addf %9, %11 : vector<8x128xf32>
    %cst_11 = arith.constant 0.000000e+00 : f32
    %13 = vector.broadcast %cst_11 : f32 to vector<8x128xf32>
    %14 = arith.maximumf %12, %13 : vector<8x128xf32>
    %c0_12 = arith.constant 0 : index
    %c0_13 = arith.constant 0 : index
    %15 = vector.load %arg6[%c0_12, %c0_13] : memref<1x128xf32, #tpu.memory_space<vmem>>, vector<1x128xf32>
    %16 = vector.broadcast %15 : vector<1x128xf32> to vector<8x128xf32>
    %17 = arith.addf %14, %16 : vector<8x128xf32>
    %cst_14 = arith.constant dense<0xFF800000> : vector<8xf32>
    %18 = vector.multi_reduction <maximumf>, %17, %cst_14 [1] : vector<8x128xf32> to vector<8xf32>
    %19 = vector.shape_cast %18 : vector<8xf32> to vector<8x1xf32>
    %20 = vector.broadcast %19 : vector<8x1xf32> to vector<8x128xf32>
    %21 = arith.subf %17, %20 : vector<8x128xf32>
    %22 = math.exp %21 : vector<8x128xf32>
    %cst_15 = arith.constant dense<0.000000e+00> : vector<8xf32>
    %23 = vector.multi_reduction <add>, %22, %cst_15 [1] : vector<8x128xf32> to vector<8xf32>
    %24 = vector.shape_cast %23 : vector<8xf32> to vector<8x1xf32>
    %25 = math.log %24 : vector<8x1xf32>
    %26 = vector.broadcast %25 : vector<8x1xf32> to vector<8x128xf32>
    %27 = arith.subf %21, %26 : vector<8x128xf32>
    %c0_16 = arith.constant 0 : index
    %c0_17 = arith.constant 0 : index
    %28 = vector.load %arg7[%c0_16, %c0_17] : memref<8x128xf32, #tpu.memory_space<vmem>>, vector<8x128xf32>
    tpu.vector_store %arg7[%c0_16, %c0_17], %27 {strides = array<i32>} : memref<8x128xf32, #tpu.memory_space<vmem>>, vector<8x128xf32>,
    return
  }
  func.func @transform_0(%arg0: i32) -> (i32, i32) {
    %c0_i32 = arith.constant 0 : i32
    %c0_i32_0 = arith.constant 0 : i32
    return %arg0, %c0_i32 : i32, i32
  }
  func.func @transform_1(%arg0: i32) -> (i32, i32) {
    %c0_i32 = arith.constant 0 : i32
    %c0_i32_0 = arith.constant 0 : i32
    %c0_i32_1 = arith.constant 0 : i32
    return %c0_i32, %c0_i32_0 : i32, i32
  }
  func.func @transform_2(%arg0: i32) -> (i32, i32) {
    %c0_i32 = arith.constant 0 : i32
    %c0_i32_0 = arith.constant 0 : i32
    %c0_i32_1 = arith.constant 0 : i32
    return %c0_i32, %c0_i32_0 : i32, i32
  }
  func.func @transform_3(%arg0: i32) -> (i32, i32) {
    %c0_i32 = arith.constant 0 : i32
    %c0_i32_0 = arith.constant 0 : i32
    %c0_i32_1 = arith.constant 0 : i32
    return %c0_i32, %c0_i32_0 : i32, i32
  }
  func.func @transform_4(%arg0: i32) -> (i32, i32) {
    %c0_i32 = arith.constant 0 : i32
    %c0_i32_0 = arith.constant 0 : i32
    %c0_i32_1 = arith.constant 0 : i32
    return %c0_i32, %c0_i32_0 : i32, i32
  }
  func.func @transform_5(%arg0: i32) -> (i32, i32) {
    %c0_i32 = arith.constant 0 : i32
    %c0_i32_0 = arith.constant 0 : i32
    %c0_i32_1 = arith.constant 0 : i32
    return %c0_i32, %c0_i32_0 : i32, i32
  }
  func.func @transform_6(%arg0: i32) -> (i32, i32) {
    %c0_i32 = arith.constant 0 : i32
    %c0_i32_0 = arith.constant 0 : i32
    return %arg0, %c0_i32 : i32, i32
  }
}

</mosaic_0001>

<bundles_post_ra>
// kernel: tpu_custom_call.1
= control target key start
LH: loop header
LB: loop body
LE: loop exit
PB: predicated region body
PF: predicated region fallthrough
CT: control target
= control target key end

     0   :  { %s1155_s0 = inlined_call_operand.hbm [shape: f32[16,32], index: 0, kind: input, shape index: {}]   ;;  %s1156_s1 = inlined_call_operand.hbm [shape: f32[32,128], index: 1, kind: input, shape index: {}]   ;;  %s1157_s2 = inlined_call_operand.vmem [shape: f32[1,128], index: 2, kind: input, shape index: {}]   ;;  %s1158_s3 = inlined_call_operand.hbm [shape: f32[128,128], index: 3, kind: input, shape index: {}]   ;;  %s1159_s4 = inlined_call_operand.vmem [shape: f32[1,128], index: 4, kind: input, shape index: {}]   ;;  %s1160_s5 = inlined_call_operand.vmem [shape: f32[1,128], index: 5, kind: input, shape index: {}]   ;;  %s1161_s6 = inlined_call_operand.hbm [shape: f32[16,128], index: 6, kind: output, shape index: {}]  }
   0x1   :  { %1166 = sst [smem:[#allocation12_spill]] %s1156_s1 }
   0x2   :  { %11 = vsyncpa [#allocation3], 0 }
   0x3   :  { %13 = vsyncpa [#allocation3 + $0x1], 0 }
   0x4   :  { %14 = vsyncpa [#allocation6], 0 }
   0x5   :  { %15 = vsyncpa [#allocation4], 0 }
   0x6   :  { %17 = vsyncpa [#allocation4 + $0x1], 0  ;;  %s955_s21 = smov 0   ;;  %s957_s22 = smov 0  }
   0x7   :  { %s959_s23 = smov 0   ;;  %s961_s24 = smov 0  }
   0x8 LB: > { %s976_s25 = sadd.s32 4294967295, %s910_s24   ;;  %s599_s26 = sadd.s32 4294967294, %s910_s24   ;;  %s910_s24 = sphi %s961_s24, %s1185_s24   ;;  %s906_s23 = sphi %s959_s23, %s1184_s23   ;;  %s902_s22 = sphi %s957_s22, %s1183_s22   ;;  %s898_s21 = sphi %s955_s21, %s1182_s21  }
   0x9   : > { %p43_p0 = scmp.ne.s32.totalorder %s902_s22, %s898_s21  ;;  %p1162_p1 = scmp.eq.s32.totalorder %s976_s25, 0 }
   0xa   : > { %p178_p3 = scmp.eq.s32.totalorder %s599_s26, 1  ;;  %p600_p5 = scmp.ge.s32.totalorder %s910_s24, 1 }
   0xb   : > { %p985_p4 = por %p1162_p1, %p43_p0  ;;  %p185_p7 = scmp.lt.s32.totalorder %s910_s24, 3 }
   0xc   : > { %p990_p6 = por %p178_p3, %p43_p0  ;;  %s912_s30 = smov [#allocation5]  }
   0xd   : > { %s1167_s27 = scalar_select %p985_p4, 1, 0 }
   0xe   : > { %s1168_s28 = scalar_select %p990_p6, 1, 0 }
   0xf   : > { %p995_p8 = pnand %p600_p5, %p185_p7  ;;  %s197_s7 = sshll.u32 %s912_s30, 4  ;;  %s198_s7 = int_to_ptr.vmem [resolvable:$true] %s197_s7 }
  0x10   : > { %s913_s9 = smov [#allocation7]   ;;  %s773_s11 = scalar_lea.vmem %s198_s7, 512 }
  0x11   : > { %s1169_s29 = scalar_select %p995_p8, 1, 0 }
  0x12   : > { %p699_p9 = pneg %p995_p8  ;;  %s213_s10 = sshll.u32 %s913_s9, 4  ;;  %s214_s10 = int_to_ptr.vmem [resolvable:$true] %s213_s10 }
  0x13   : > { %p774_p13 = scmp.ne.s32.totalorder %s198_s7, %s773_s11  ;;  %p781_p5 = scmp.lt.s32.totalorder %s198_s7, %s198_s7 }
  0x14   : > { %p1004_p11 = pnand %p699_p9, %p1162_p1  ;;  %p782_p7 = scmp.lt.s32.totalorder %s773_s11, %s773_s11 }
  0x16   : > { %p764_p12 = pneg %p1004_p11  ;;  %p783_p10 = por %p782_p7, %p781_p5 }
  0x18   : > { %p776_p0 = pnand %p774_p13, %p764_p12 }
  0x1a   : > { %p777_p3 = pneg %p776_p0 }
  0x1c   : > { %p784_p9 = pnand %p783_p10, %p777_p3 }
  0x1e   : > { %787 = shalt.err (!%p784_p9)
}
  0x1f   : > { %s914_s12 = smov 128   ;;  %s915_s13 = smov 8  }
  0x20   : > { %s1171_s1 = sld [smem:[#allocation12_spill]]  ;;  %s799_s16 = scalar_lea.vmem %s214_s10, 2048 }
  0x21   : > { %p800_p1 = scmp.ne.s32.totalorder %s214_s10, %s799_s16  ;;  %p807_p2 = scmp.lt.s32.totalorder %s214_s10, %s214_s10 }
  0x22   : > { %p808_p6 = scmp.lt.s32.totalorder %s799_s16, %s799_s16 }
  0x23   : > { %p802_p13 = pnand %p800_p1, %p764_p12 }
  0x24   : > { %p809_p5 = por %p808_p6, %p807_p2 }
  0x25   : > { %p803_p0 = pneg %p802_p13 }
  0x26   : > { %702 = dma.hbm_to_vmem [thread:$0]  (!%p1004_p11), %s1171_s1, 512, %s198_s7, [#allocation6], %s914_s12, %s914_s12, %s915_s13  }
  0x27   : > { %p810_p10 = pnand %p809_p5, %p803_p0 }
  0x29   : > { %813 = shalt.err (!%p810_p10)
}
  0x2a   : > { %705 = dma.hbm_to_vmem [thread:$0]  (!%p1004_p11), %s1158_s3, 2048, %s214_s10, [#allocation6], %s914_s12, %s914_s12, %s915_s13  }
  0x2b   : > { %s1027_s19 = sadd.s32 1, %s910_s24   ;;  %s30_s20 = sadd.s32 1, %s906_s23 }
  0x2c   : > { %s27_s26 = ssub.s32 %s910_s24, %s1027_s19  ;;  %p37_p1 = scmp.ne.s32.totalorder %s906_s23, %s902_s22 }
  0x2d   : > { %p28_p2 = scmp.eq.s32.totalorder %s27_s26, 0  ;;  %p38_p6 = scmp.eq.s32.totalorder %s910_s24, 0 }
  0x2e   : > { %p1172_p12 = scmp.eq.s32.totalorder %s976_s25, 1  ;;  %p716_p7 = scmp.lt.s32.totalorder %s910_s24, 2 }
  0x2f   : > { %s1043_s7 = scalar_select %p28_p2, %s906_s23, %s30_s20  }
  0x30   : > { %p1037_p3 = por %p1172_p12, %p37_p1  ;;  %p39_p9 = por %p38_p6, %p37_p1 }
  0x31   : > { %s233_s8 = sand.u32 1, %s906_s23   ;;  %s605_s10 = sshll.u32 %s910_s24, 7 }
  0x32   : > { %s1173_s30 = scalar_select %p1037_p3, 1, 0 }
  0x33   : > { %s604_s9 = sshll.u32 %s233_s8, 3  ;;  %s1050_s13 = scalar_lea.hbm %s1155_s0, %s605_s10 }
  0x34   : > { %s237_s14 = scalar_lea.vmem [#allocation2], %s604_s9  ;;  %p1052_p11 = pnand %p716_p7, %p39_p9 }
  0x35   : > { %s244_s15 = sshll.u32 %s237_s14, 4  ;;  %s234_s17 = scalar_lea.sflag [#allocation3], %s233_s8  ;;  %s245_s15 = int_to_ptr.vmem [resolvable:$true] %s244_s15 }
  0x36   : > { %s814_s18 = scalar_lea.hbm %s1050_s13, 128  ;;  %p816_p0 = pneg %p1052_p11 }
  0x37   : > { %p815_p13 = scmp.ne.s32.totalorder %s1050_s13, %s814_s18  ;;  %s819_s10 = scalar_lea.hbm %s1155_s0, 256 }
  0x38   : > { %p820_p1 = scmp.lt.s32.totalorder %s1050_s13, %s1155_s0  ;;  %p821_p2 = scmp.lt.s32.totalorder %s819_s10, %s814_s18 }
  0x39   : > { %p817_p5 = pnand %p816_p0, %p815_p13 }
  0x3a   : > { %p822_p6 = por %p821_p2, %p820_p1 }
  0x3b   : > { %p818_p10 = pneg %p817_p5 }
  0x3d   : > { %p823_p12 = pnand %p822_p6, %p818_p10 }
  0x3f   : > { %826 = shalt.err (!%p823_p12)
}
  0x40   : > { %s827_s12 = scalar_lea.vmem %s245_s15, 128  ;;  %s916_s8 = smov [#allocation2]  }
  0x41   : > { %p828_p7 = scmp.ne.s32.totalorder %s245_s15, %s827_s12  ;;  %s832_s14 = sshll.u32 %s916_s8, 4  ;;  %s833_s14 = int_to_ptr.vmem [resolvable:$false] %s832_s14 }
  0x42   : > { %s834_s1 = scalar_lea.vmem %s833_s14, 256  ;;  %p835_p13 = scmp.lt.s32.totalorder %s245_s15, %s833_s14 }
  0x43   : > { %p830_p9 = pnand %p828_p7, %p816_p0  ;;  %p836_p5 = scmp.lt.s32.totalorder %s834_s1, %s827_s12 }
  0x45   : > { %p831_p3 = pneg %p830_p9  ;;  %p837_p4 = por %p836_p5, %p835_p13 }
  0x47   : > { %p838_p8 = pnand %p837_p4, %p831_p3 }
  0x49   : > { %841 = shalt.err (!%p838_p8)
}
  0x4a   : > { %709 = dma.hbm_to_vmem [thread:$0]  (!%p1052_p11), %s1050_s13, 128, %s245_s15, %s234_s17  }
  0x4b   : > { %p1175_p10 = scmp.ne.s32.totalorder %s1169_s29, 0 }
  0x4c   : > { %s1073_s18 = sand.u32 (!%p1175_p10), 1, %s902_s22   ;;  %p1176_p4 = scmp.ne.s32.totalorder (!%p1175_p10), %s1167_s27, 0 }
  0x4d   : > { %253 = sbr.rel (%p1175_p10) target bundleno = 817 (0x331), region = 44  ;;  %s607_s20 = sshll.u32 (!%p1175_p10), %s1073_s18, 3 }
  0x4e   : > { %s256_s26 = scalar_lea.sflag (!%p1175_p10), [#allocation3], %s1073_s18  ;;  %s259_s1 = scalar_lea.vmem (!%p1175_p10), [#allocation2], %s607_s20 }
  0x52   : > { %885 = dma.done.wait (%p1176_p4), %s256_s26, 128  }
  0x53   : > { %887 = vsyncadd (%p1176_p4), %s256_s26, 4294967168  ;;  %p1177_p8 = scmp.eq.s32.totalorder %s976_s25, 0 }
  0x55   : > { %889 = dma.done.wait (%p1177_p8), [#allocation6], 2560   ;;  %p1178_p3 = pmov %p1177_p8 }
  0x56   : > { %v917_v0 = vmov 0.0   ;;  %vm918_vm0 = vmmov 0   ;;  %v300_v1 = vld [vmem:[#allocation5 + $0x18] sm:$0xff]  ;;  %v299_v2 = vld [vmem:[#allocation5 + $0x10] sm:$0xff]  ;;  %v298_v4 = vld [vmem:[#allocation5 + $0x8] sm:$0xff]  ;;  %vm308_vm1 = vcmask 261120  }
  0x57   : > { %891 = vsyncadd (%p1178_p3), [#allocation6], 4294964736  ;;  %641 = vmatprep.subr.mxu0 %v917_v0  ;;  %649 = vmatprep.mubr.msk.f32.mxu0 %vm918_vm0, %v917_v0  ;;  %v398_v3 = vld [vmem:[#allocation7 + $0x78] sm:$0xff]  ;;  %v397_v5 = vld [vmem:[#allocation7 + $0x70] sm:$0xff]  ;;  %s616_s10 = sshll.u32 %s976_s25, 7  ;;  %s295_s11 = scalar_lea.vmem [#allocation8], %s607_s20 }
  0x58   : > { %652 = vmatprep.subr.mxu1 %v917_v0  ;;  %684 = vmatprep.mubr.msk.f32.mxu1 %vm918_vm0, %v917_v0  ;;  %v396_v6 = vld [vmem:[#allocation7 + $0x68] sm:$0xff]  ;;  %v297_v7 = vld [vmem:[#allocation5] sm:$0xff]  ;;  %v296_v8 = vld [vmem:[%s259_s1] sm:$0xff]  ;;  %s510_s9 = sshll.u32 %s295_s11, 4  ;;  %s508_s14 = scalar_lea.hbm %s1161_s6, %s616_s10  ;;  %s511_s9 = int_to_ptr.vmem [resolvable:$true] %s510_s9 }
  0x59   : > { %642 = vmatpush3.msra.mxu0 %v300_v1  ;;  %653 = vmatpush3.msra.mxu1 %v398_v3  ;;  %v395_v9 = vld [vmem:[#allocation7 + $0x60] sm:$0xff]  ;;  %v394_v10 = vld [vmem:[#allocation7 + $0x58] sm:$0xff]  ;;  %v393_v11 = vld [vmem:[#allocation7 + $0x50] sm:$0xff]  ;;  %s497_s26 = scalar_lea.sflag [#allocation4], %s1073_s18  ;;  %s842_s1 = scalar_lea.vmem %s511_s9, 128 }
  0x5a   : > { %643 = vmatprep.subr.mxu0 %v917_v0  ;;  %654 = vmatprep.subr.mxu1 %v917_v0  ;;  %v392_v12 = vld [vmem:[#allocation7 + $0x48] sm:$0xff]  ;;  %v391_v13 = vld [vmem:[#allocation7 + $0x40] sm:$0xff]  ;;  %v390_v14 = vld [vmem:[#allocation7 + $0x38] sm:$0xff]  ;;  %p843_p11 = scmp.ne.s32.totalorder %s511_s9, %s842_s1  ;;  %p1179_p0 = scmp.ne.s32.totalorder %s1173_s30, 0 }
  0x5b   : > { %644 = vmatpush3.msra.mxu0 %v299_v2  ;;  %655 = vmatpush3.msra.mxu1 %v397_v5  ;;  %v389_v15 = vld [vmem:[#allocation7 + $0x30] sm:$0xff]  ;;  %v388_v16 = vld [vmem:[#allocation7 + $0x28] sm:$0xff]  ;;  %v387_v17 = vld [vmem:[#allocation7 + $0x20] sm:$0xff]  ;;  %s919_s27 = smov [#allocation8]  }
  0x5c   : > { %645 = vmatprep.subr.mxu0 %v917_v0  ;;  %656 = vmatprep.subr.mxu1 %v917_v0  ;;  %v386_v18 = vld [vmem:[#allocation7 + $0x18] sm:$0xff]  ;;  %v385_v19 = vld [vmem:[#allocation7 + $0x10] sm:$0xff]  ;;  %v384_v20 = vld [vmem:[#allocation7 + $0x8] sm:$0xff]  ;;  %p844_p1 = pnand %p843_p11, %p1179_p0  ;;  %s846_s29 = sshll.u32 %s919_s27, 4  ;;  %s847_s29 = int_to_ptr.vmem [resolvable:$false] %s846_s29 }
  0x5d   : > { %646 = vmatpush3.msra.mxu0 %v298_v4  ;;  %657 = vmatpush3.msra.mxu1 %v396_v6  ;;  %v383_v21 = vld [vmem:[#allocation7] sm:$0xff]  ;;  %v611_v22 = vld [vmem:[%s1157_s2] ss:$0 sm:$0xff]  ;;  %s848_s25 = scalar_lea.vmem %s847_s29, 256  ;;  %p849_p6 = scmp.lt.s32.totalorder %s511_s9, %s847_s29 }
  0x5e   : > { %647 = vmatprep.subr.mxu0 %v917_v0  ;;  %658 = vmatprep.subr.mxu1 %v917_v0  ;;  %v613_v27 = vld [vmem:[%s1159_s4] ss:$0 sm:$0xff]  ;;  %p845_p2 = pneg %p844_p1  ;;  %p850_p12 = scmp.lt.s32.totalorder %s848_s25, %s842_s1 }
  0x5f   : > { %648 = vmatpush3.msra.mxu0 %v297_v7  ;;  %659 = vmatpush3.msra.mxu1 %v395_v9  ;;  %v614_v31 = vld [vmem:[%s1160_s5] ss:$0 sm:$0xff] }
  0x60   : > { %650 = vmatmul.mubr.msk.f32.vlgmr.msra.gmra.mxu0 %vm308_vm1, %v296_v8  ;;  %660 = vmatprep.subr.mxu1 %v917_v0  ;;  %p851_p7 = por %p850_p12, %p849_p6 }
  0x61   : > { %661 = vmatpush3.msra.mxu1 %v394_v10 }
  0x62   : > { %662 = vmatprep.subr.mxu1 %v917_v0  ;;  %p852_p9 = pnand %p851_p7, %p845_p2 }
  0x63   : > { %663 = vmatpush3.msra.mxu1 %v393_v11 }
  0x64   : > { %664 = vmatprep.subr.mxu1 %v917_v0 }
  0x65   : > { %665 = vmatpush3.msra.mxu1 %v392_v12 }
  0x66   : > { %666 = vmatprep.subr.mxu1 %v917_v0 }
  0x67   : > { %667 = vmatpush3.msra.mxu1 %v391_v13 }
  0x68   : > { %668 = vmatprep.subr.mxu1 %v917_v0 }
  0x69   : > { %669 = vmatpush3.msra.mxu1 %v390_v14 }
  0x6a   : > { %670 = vmatprep.subr.mxu1 %v917_v0 }
  0x6b   : > { %671 = vmatpush3.msra.mxu1 %v389_v15 }
  0x6c   : > { %672 = vmatprep.subr.mxu1 %v917_v0 }
  0x6d   : > { %673 = vmatpush3.msra.mxu1 %v388_v16 }
  0x6e   : > { %674 = vmatprep.subr.mxu1 %v917_v0 }
  0x6f   : > { %675 = vmatpush3.msra.mxu1 %v387_v17 }
  0x70   : > { %676 = vmatprep.subr.mxu1 %v917_v0 }
  0x71   : > { %677 = vmatpush3.msra.mxu1 %v386_v18 }
  0x72   : > { %678 = vmatprep.subr.mxu1 %v917_v0 }
  0x73   : > { %679 = vmatpush3.msra.mxu1 %v385_v19 }
  0x74   : > { %680 = vmatprep.subr.mxu1 %v917_v0 }
  0x75   : > { %681 = vmatpush3.msra.mxu1 %v384_v20 }
  0x76   : > { %682 = vmatprep.subr.mxu1 %v917_v0 }
  0x77   : > { %683 = vmatpush3.msra.mxu1 %v383_v21 }
 0x120   : > { %v378_v23 = vpop.f32.mrf.mxu0 }
 0x121   : > { %v379_v24 = vadd.f32 %v611_v22, %v378_v23 }
 0x122   : > { %v651_v25 = vpop.f32.mrf.mxu0 }
 0x123   : > { %v382_v26 = vmax.f32 %v379_v24, 0.0 }
 0x125   : > { %685 = vmatmul.mubr.f32.vlgmr.msra.gmra.mxu1 %v382_v26 }
 0x1e5   : > { %v472_v28 = vpop.f32.mrf.mxu1 }
 0x1e6   : > { %v473_v29 = vadd.f32 %v613_v27, %v472_v28 }
 0x1e7   : > { %v686_v30 = vpop.f32.mrf.mxu1 }
 0x1e8   : > { %v476_v32 = vmax.f32 %v473_v29, 0.0 }
 0x1ea   : > { %v484_v33 = vadd.f32 %v614_v31, %v476_v32 }
 0x1ec   : > { %485 = vmax.xlane.f32.xlu0 %v484_v33 }
 0x275   : > { %v486_v34 = vpop.xlane.xlu0 %485 }
 0x276   : > { %v487_v35 = vsub.f32 %v484_v33, %v486_v34 }
 0x278   : > { %v488_v36 = vmul.f32 1.442695, %v487_v35 }
 0x27a   : > { %758 = vpow2.f32 %v488_v36 }
 0x287   : > { %v759_v37 = vpop.eup %758 }
 0x288   : > { %490 = vadd.xlane.f32.xlu0 %v759_v37 }
 0x311   : > { %v491_v38 = vpop.xlane.xlu0 %490 }
 0x312   : > { %760 = vlog2.f32 %v491_v38 }
 0x31f   : > { %v761_v39 = vpop.eup %760 }
 0x320   : > { %v493_v40 = vmul.f32 0.6931472, %v761_v39 }
 0x322   : > { %v494_v41 = vsub.f32 %v487_v35, %v493_v40 }
 0x324   : > { %495 = vst [vmem:[%s295_s11] sm:$0xff] %v494_v41 }
 0x325   : > { %855 = shalt.err (!%p852_p9)
}
 0x326   : > { %s856_s20 = scalar_lea.hbm %s508_s14, 128  ;;  %s860_s15 = scalar_lea.hbm %s1161_s6, 256 }
 0x327   : > { %p857_p13 = scmp.ne.s32.totalorder %s508_s14, %s856_s20  ;;  %p861_p4 = scmp.lt.s32.totalorder %s508_s14, %s1161_s6 }
 0x328   : > { %p862_p8 = scmp.lt.s32.totalorder %s860_s15, %s856_s20 }
 0x329   : > { %p858_p5 = pnand %p857_p13, %p1179_p0 }
 0x32a   : > { %p863_p3 = por %p862_p8, %p861_p4 }
 0x32b   : > { %p859_p10 = pneg %p858_p5 }
 0x32d   : > { %p864_p11 = pnand %p863_p3, %p859_p10 }
 0x32f   : > { %867 = shalt.err (!%p864_p11)
}
 0x330   : > { %697 = dma.vmem_to_hbm [thread:$0]  (%p1179_p0), %s511_s9, 128, %s508_s14, %s497_s26  }
 0x331 PF: > { %s522_s10 = sand.u32 1, %s898_s21   ;;  %p1180_p1 = scmp.ne.s32.totalorder %s1168_s28, 0 }
 0x332   : > { %p1181_p2 = scmp.ge.s32.totalorder %s910_s24, 2  ;;  %s523_s11 = scalar_lea.sflag [#allocation4], %s522_s10 }
 0x334   : > { %p711_p6 = pnand %p1181_p2, %p1180_p1 }
 0x336   : > { %p712_p12 = pneg %p711_p6 }
 0x338   : > { %893 = dma.done.wait (%p712_p12), %s523_s11, 128  }
 0x339   : > { %895 = vsyncadd (%p712_p12), %s523_s11, 4294967168  ;;  %p20_p7 = scmp.ge.s32.totalorder %s1027_s19, 4   ;;  %s1182_s21 = smov %s902_s22 }
 0x33a   : > { %s1183_s22 = smov %s906_s23  ;;  %s1184_s23 = smov %s1043_s7 }
 0x33b   : > { %s1185_s24 = smov %s1027_s19  ;;  %22 = sbr.rel (!%p20_p7) target bundleno = 8 (0x8), region = 97 }
 0x340   :  { %528 = vsyncpa [#allocation3], 1 }
 0x341   :  { %530 = vsyncpa [#allocation3 + $0x1], 1 }
 0x342   :  { %531 = vsyncpa [#allocation6], 1 }
 0x343   :  { %532 = vsyncpa [#allocation4], 1 }
 0x344   :  { %534 = vsyncpa [#allocation4 + $0x1], 1 }

// kernel: tpu_custom_call.1
= control target key start
LH: loop header
LB: loop body
LE: loop exit
PB: predicated region body
PF: predicated region fallthrough
CT: control target
= control target key end

     0   :  { %s1155_s0 = inlined_call_operand.hbm [shape: f32[16,32], index: 0, kind: input, shape index: {}]   ;;  %s1156_s1 = inlined_call_operand.hbm [shape: f32[32,128], index: 1, kind: input, shape index: {}]   ;;  %s1157_s2 = inlined_call_operand.vmem [shape: f32[1,128], index: 2, kind: input, shape index: {}]   ;;  %s1158_s3 = inlined_call_operand.hbm [shape: f32[128,128], index: 3, kind: input, shape index: {}]   ;;  %s1159_s4 = inlined_call_operand.vmem [shape: f32[1,128], index: 4, kind: input, shape index: {}]   ;;  %s1160_s5 = inlined_call_operand.vmem [shape: f32[1,128], index: 5, kind: input, shape index: {}]   ;;  %s1161_s6 = inlined_call_operand.hbm [shape: f32[16,128], index: 6, kind: output, shape index: {}]  }
   0x1   :  { %1166 = sst [smem:[#allocation12_spill]] %s1156_s1 }
   0x2   :  { %11 = vsyncpa [#allocation3], 0 }
   0x3   :  { %13 = vsyncpa [#allocation3 + $0x1], 0 }
   0x4   :  { %14 = vsyncpa [#allocation6], 0 }
   0x5   :  { %15 = vsyncpa [#allocation4], 0 }
   0x6   :  { %17 = vsyncpa [#allocation4 + $0x1], 0  ;;  %s955_s21 = smov 0   ;;  %s957_s22 = smov 0  }
   0x7   :  { %s959_s23 = smov 0   ;;  %s961_s24 = smov 0  }
   0x8 LB: > { %s976_s25 = sadd.s32 4294967295, %s910_s24   ;;  %s599_s26 = sadd.s32 4294967294, %s910_s24   ;;  %s910_s24 = sphi %s961_s24, %s1185_s24   ;;  %s906_s23 = sphi %s959_s23, %s1184_s23   ;;  %s902_s22 = sphi %s957_s22, %s1183_s22   ;;  %s898_s21 = sphi %s955_s21, %s1182_s21  }
   0x9   : > { %p43_p0 = scmp.ne.s32.totalorder %s902_s22, %s898_s21  ;;  %p1162_p1 = scmp.eq.s32.totalorder %s976_s25, 0 }
   0xa   : > { %p178_p3 = scmp.eq.s32.totalorder %s599_s26, 1  ;;  %p600_p5 = scmp.ge.s32.totalorder %s910_s24, 1 }
   0xb   : > { %p985_p4 = por %p1162_p1, %p43_p0  ;;  %p185_p7 = scmp.lt.s32.totalorder %s910_s24, 3 }
   0xc   : > { %p990_p6 = por %p178_p3, %p43_p0  ;;  %s912_s30 = smov [#allocation5]  }
   0xd   : > { %s1167_s27 = scalar_select %p985_p4, 1, 0 }
   0xe   : > { %s1168_s28 = scalar_select %p990_p6, 1, 0 }
   0xf   : > { %p995_p8 = pnand %p600_p5, %p185_p7  ;;  %s197_s7 = sshll.u32 %s912_s30, 4  ;;  %s198_s7 = int_to_ptr.vmem [resolvable:$true] %s197_s7 }
  0x10   : > { %s913_s9 = smov [#allocation7]   ;;  %s773_s11 = scalar_lea.vmem %s198_s7, 512 }
  0x11   : > { %s1169_s29 = scalar_select %p995_p8, 1, 0 }
  0x12   : > { %p699_p9 = pneg %p995_p8  ;;  %s213_s10 = sshll.u32 %s913_s9, 4  ;;  %s214_s10 = int_to_ptr.vmem [resolvable:$true] %s213_s10 }
  0x13   : > { %p774_p13 = scmp.ne.s32.totalorder %s198_s7, %s773_s11  ;;  %p781_p5 = scmp.lt.s32.totalorder %s198_s7, %s198_s7 }
  0x14   : > { %p1004_p11 = pnand %p699_p9, %p1162_p1  ;;  %p782_p7 = scmp.lt.s32.totalorder %s773_s11, %s773_s11 }
  0x16   : > { %p764_p12 = pneg %p1004_p11  ;;  %p783_p10 = por %p782_p7, %p781_p5 }
  0x18   : > { %p776_p0 = pnand %p774_p13, %p764_p12 }
  0x1a   : > { %p777_p3 = pneg %p776_p0 }
  0x1c   : > { %p784_p9 = pnand %p783_p10, %p777_p3 }
  0x1e   : > { %787 = shalt.err (!%p784_p9)
}
  0x1f   : > { %s914_s12 = smov 128   ;;  %s915_s13 = smov 8  }
  0x20   : > { %s1171_s1 = sld [smem:[#allocation12_spill]]  ;;  %s799_s16 = scalar_lea.vmem %s214_s10, 2048 }
  0x21   : > { %p800_p1 = scmp.ne.s32.totalorder %s214_s10, %s799_s16  ;;  %p807_p2 = scmp.lt.s32.totalorder %s214_s10, %s214_s10 }
  0x22   : > { %p808_p6 = scmp.lt.s32.totalorder %s799_s16, %s799_s16 }
  0x23   : > { %p802_p13 = pnand %p800_p1, %p764_p12 }
  0x24   : > { %p809_p5 = por %p808_p6, %p807_p2 }
  0x25   : > { %p803_p0 = pneg %p802_p13 }
  0x26   : > { %702 = dma.hbm_to_vmem [thread:$0]  (!%p1004_p11), %s1171_s1, 512, %s198_s7, [#allocation6], %s914_s12, %s914_s12, %s915_s13  }
  0x27   : > { %p810_p10 = pnand %p809_p5, %p803_p0 }
  0x29   : > { %813 = shalt.err (!%p810_p10)
}
  0x2a   : > { %705 = dma.hbm_to_vmem [thread:$0]  (!%p1004_p11), %s1158_s3, 2048, %s214_s10, [#allocation6], %s914_s12, %s914_s12, %s915_s13  }
  0x2b   : > { %s1027_s19 = sadd.s32 1, %s910_s24   ;;  %s30_s20 = sadd.s32 1, %s906_s23 }
  0x2c   : > { %s27_s26 = ssub.s32 %s910_s24, %s1027_s19  ;;  %p37_p1 = scmp.ne.s32.totalorder %s906_s23, %s902_s22 }
  0x2d   : > { %p28_p2 = scmp.eq.s32.totalorder %s27_s26, 0  ;;  %p38_p6 = scmp.eq.s32.totalorder %s910_s24, 0 }
  0x2e   : > { %p1172_p12 = scmp.eq.s32.totalorder %s976_s25, 1  ;;  %p716_p7 = scmp.lt.s32.totalorder %s910_s24, 2 }
  0x2f   : > { %s1043_s7 = scalar_select %p28_p2, %s906_s23, %s30_s20  }
  0x30   : > { %p1037_p3 = por %p1172_p12, %p37_p1  ;;  %p39_p9 = por %p38_p6, %p37_p1 }
  0x31   : > { %s233_s8 = sand.u32 1, %s906_s23   ;;  %s605_s10 = sshll.u32 %s910_s24, 7 }
  0x32   : > { %s1173_s30 = scalar_select %p1037_p3, 1, 0 }
  0x33   : > { %s604_s9 = sshll.u32 %s233_s8, 3  ;;  %s1050_s13 = scalar_lea.hbm %s1155_s0, %s605_s10 }
  0x34   : > { %s237_s14 = scalar_lea.vmem [#allocation2], %s604_s9  ;;  %p1052_p11 = pnand %p716_p7, %p39_p9 }
  0x35   : > { %s244_s15 = sshll.u32 %s237_s14, 4  ;;  %s234_s17 = scalar_lea.sflag [#allocation3], %s233_s8  ;;  %s245_s15 = int_to_ptr.vmem [resolvable:$true] %s244_s15 }
  0x36   : > { %s814_s18 = scalar_lea.hbm %s1050_s13, 128  ;;  %p816_p0 = pneg %p1052_p11 }
  0x37   : > { %p815_p13 = scmp.ne.s32.totalorder %s1050_s13, %s814_s18  ;;  %s819_s10 = scalar_lea.hbm %s1155_s0, 256 }
  0x38   : > { %p820_p1 = scmp.lt.s32.totalorder %s1050_s13, %s1155_s0  ;;  %p821_p2 = scmp.lt.s32.totalorder %s819_s10, %s814_s18 }
  0x39   : > { %p817_p5 = pnand %p816_p0, %p815_p13 }
  0x3a   : > { %p822_p6 = por %p821_p2, %p820_p1 }
  0x3b   : > { %p818_p10 = pneg %p817_p5 }
  0x3d   : > { %p823_p12 = pnand %p822_p6, %p818_p10 }
  0x3f   : > { %826 = shalt.err (!%p823_p12)
}
  0x40   : > { %s827_s12 = scalar_lea.vmem %s245_s15, 128  ;;  %s916_s8 = smov [#allocation2]  }
  0x41   : > { %p828_p7 = scmp.ne.s32.totalorder %s245_s15, %s827_s12  ;;  %s832_s14 = sshll.u32 %s916_s8, 4  ;;  %s833_s14 = int_to_ptr.vmem [resolvable:$false] %s832_s14 }
  0x42   : > { %s834_s1 = scalar_lea.vmem %s833_s14, 256  ;;  %p835_p13 = scmp.lt.s32.totalorder %s245_s15, %s833_s14 }
  0x43   : > { %p830_p9 = pnand %p828_p7, %p816_p0  ;;  %p836_p5 = scmp.lt.s32.totalorder %s834_s1, %s827_s12 }
  0x45   : > { %p831_p3 = pneg %p830_p9  ;;  %p837_p4 = por %p836_p5, %p835_p13 }
  0x47   : > { %p838_p8 = pnand %p837_p4, %p831_p3 }
  0x49   : > { %841 = shalt.err (!%p838_p8)
}
  0x4a   : > { %709 = dma.hbm_to_vmem [thread:$0]  (!%p1052_p11), %s1050_s13, 128, %s245_s15, %s234_s17  }
  0x4b   : > { %p1175_p10 = scmp.ne.s32.totalorder %s1169_s29, 0 }
  0x4c   : > { %s1073_s18 = sand.u32 (!%p1175_p10), 1, %s902_s22   ;;  %p1176_p4 = scmp.ne.s32.totalorder (!%p1175_p10), %s1167_s27, 0 }
  0x4d   : > { %253 = sbr.rel (%p1175_p10) target bundleno = 817 (0x331), region = 44  ;;  %s607_s20 = sshll.u32 (!%p1175_p10), %s1073_s18, 3 }
  0x4e   : > { %s256_s26 = scalar_lea.sflag (!%p1175_p10), [#allocation3], %s1073_s18  ;;  %s259_s1 = scalar_lea.vmem (!%p1175_p10), [#allocation2], %s607_s20 }
  0x52   : > { %885 = dma.done.wait (%p1176_p4), %s256_s26, 128  }
  0x53   : > { %887 = vsyncadd (%p1176_p4), %s256_s26, 4294967168  ;;  %p1177_p8 = scmp.eq.s32.totalorder %s976_s25, 0 }
  0x55   : > { %889 = dma.done.wait (%p1177_p8), [#allocation6], 2560   ;;  %p1178_p3 = pmov %p1177_p8 }
  0x56   : > { %v917_v0 = vmov 0.0   ;;  %vm918_vm0 = vmmov 0   ;;  %v300_v1 = vld [vmem:[#allocation5 + $0x18] sm:$0xff]  ;;  %v299_v2 = vld [vmem:[#allocation5 + $0x10] sm:$0xff]  ;;  %v298_v4 = vld [vmem:[#allocation5 + $0x8] sm:$0xff]  ;;  %vm308_vm1 = vcmask 261120  }
  0x57   : > { %891 = vsyncadd (%p1178_p3), [#allocation6], 4294964736  ;;  %641 = vmatprep.subr.mxu0 %v917_v0  ;;  %649 = vmatprep.mubr.msk.f32.mxu0 %vm918_vm0, %v917_v0  ;;  %v398_v3 = vld [vmem:[#allocation7 + $0x78] sm:$0xff]  ;;  %v397_v5 = vld [vmem:[#allocation7 + $0x70] sm:$0xff]  ;;  %s616_s10 = sshll.u32 %s976_s25, 7  ;;  %s295_s11 = scalar_lea.vmem [#allocation8], %s607_s20 }
  0x58   : > { %652 = vmatprep.subr.mxu1 %v917_v0  ;;  %684 = vmatprep.mubr.msk.f32.mxu1 %vm918_vm0, %v917_v0  ;;  %v396_v6 = vld [vmem:[#allocation7 + $0x68] sm:$0xff]  ;;  %v297_v7 = vld [vmem:[#allocation5] sm:$0xff]  ;;  %v296_v8 = vld [vmem:[%s259_s1] sm:$0xff]  ;;  %s510_s9 = sshll.u32 %s295_s11, 4  ;;  %s508_s14 = scalar_lea.hbm %s1161_s6, %s616_s10  ;;  %s511_s9 = int_to_ptr.vmem [resolvable:$true] %s510_s9 }
  0x59   : > { %642 = vmatpush3.msra.mxu0 %v300_v1  ;;  %653 = vmatpush3.msra.mxu1 %v398_v3  ;;  %v395_v9 = vld [vmem:[#allocation7 + $0x60] sm:$0xff]  ;;  %v394_v10 = vld [vmem:[#allocation7 + $0x58] sm:$0xff]  ;;  %v393_v11 = vld [vmem:[#allocation7 + $0x50] sm:$0xff]  ;;  %s497_s26 = scalar_lea.sflag [#allocation4], %s1073_s18  ;;  %s842_s1 = scalar_lea.vmem %s511_s9, 128 }
  0x5a   : > { %643 = vmatprep.subr.mxu0 %v917_v0  ;;  %654 = vmatprep.subr.mxu1 %v917_v0  ;;  %v392_v12 = vld [vmem:[#allocation7 + $0x48] sm:$0xff]  ;;  %v391_v13 = vld [vmem:[#allocation7 + $0x40] sm:$0xff]  ;;  %v390_v14 = vld [vmem:[#allocation7 + $0x38] sm:$0xff]  ;;  %p843_p11 = scmp.ne.s32.totalorder %s511_s9, %s842_s1  ;;  %p1179_p0 = scmp.ne.s32.totalorder %s1173_s30, 0 }
  0x5b   : > { %644 = vmatpush3.msra.mxu0 %v299_v2  ;;  %655 = vmatpush3.msra.mxu1 %v397_v5  ;;  %v389_v15 = vld [vmem:[#allocation7 + $0x30] sm:$0xff]  ;;  %v388_v16 = vld [vmem:[#allocation7 + $0x28] sm:$0xff]  ;;  %v387_v17 = vld [vmem:[#allocation7 + $0x20] sm:$0xff]  ;;  %s919_s27 = smov [#allocation8]  }
  0x5c   : > { %645 = vmatprep.subr.mxu0 %v917_v0  ;;  %656 = vmatprep.subr.mxu1 %v917_v0  ;;  %v386_v18 = vld [vmem:[#allocation7 + $0x18] sm:$0xff]  ;;  %v385_v19 = vld [vmem:[#allocation7 + $0x10] sm:$0xff]  ;;  %v384_v20 = vld [vmem:[#allocation7 + $0x8] sm:$0xff]  ;;  %p844_p1 = pnand %p843_p11, %p1179_p0  ;;  %s846_s29 = sshll.u32 %s919_s27, 4  ;;  %s847_s29 = int_to_ptr.vmem [resolvable:$false] %s846_s29 }
  0x5d   : > { %646 = vmatpush3.msra.mxu0 %v298_v4  ;;  %657 = vmatpush3.msra.mxu1 %v396_v6  ;;  %v383_v21 = vld [vmem:[#allocation7] sm:$0xff]  ;;  %v611_v22 = vld [vmem:[%s1157_s2] ss:$0 sm:$0xff]  ;;  %s848_s25 = scalar_lea.vmem %s847_s29, 256  ;;  %p849_p6 = scmp.lt.s32.totalorder %s511_s9, %s847_s29 }
  0x5e   : > { %647 = vmatprep.subr.mxu0 %v917_v0  ;;  %658 = vmatprep.subr.mxu1 %v917_v0  ;;  %v613_v27 = vld [vmem:[%s1159_s4] ss:$0 sm:$0xff]  ;;  %p845_p2 = pneg %p844_p1  ;;  %p850_p12 = scmp.lt.s32.totalorder %s848_s25, %s842_s1 }
  0x5f   : > { %648 = vmatpush3.msra.mxu0 %v297_v7  ;;  %659 = vmatpush3.msra.mxu1 %v395_v9  ;;  %v614_v31 = vld [vmem:[%s1160_s5] ss:$0 sm:$0xff] }
  0x60   : > { %650 = vmatmul.mubr.msk.f32.vlgmr.msra.gmra.mxu0 %vm308_vm1, %v296_v8  ;;  %660 = vmatprep.subr.mxu1 %v917_v0  ;;  %p851_p7 = por %p850_p12, %p849_p6 }
  0x61   : > { %661 = vmatpush3.msra.mxu1 %v394_v10 }
  0x62   : > { %662 = vmatprep.subr.mxu1 %v917_v0  ;;  %p852_p9 = pnand %p851_p7, %p845_p2 }
  0x63   : > { %663 = vmatpush3.msra.mxu1 %v393_v11 }
  0x64   : > { %664 = vmatprep.subr.mxu1 %v917_v0 }
  0x65   : > { %665 = vmatpush3.msra.mxu1 %v392_v12 }
  0x66   : > { %666 = vmatprep.subr.mxu1 %v917_v0 }
  0x67   : > { %667 = vmatpush3.msra.mxu1 %v391_v13 }
  0x68   : > { %668 = vmatprep.subr.mxu1 %v917_v0 }
  0x69   : > { %669 = vmatpush3.msra.mxu1 %v390_v14 }
  0x6a   : > { %670 = vmatprep.subr.mxu1 %v917_v0 }
  0x6b   : > { %671 = vmatpush3.msra.mxu1 %v389_v15 }
  0x6c   : > { %672 = vmatprep.subr.mxu1 %v917_v0 }
  0x6d   : > { %673 = vmatpush3.msra.mxu1 %v388_v16 }
  0x6e   : > { %674 = vmatprep.subr.mxu1 %v917_v0 }
  0x6f   : > { %675 = vmatpush3.msra.mxu1 %v387_v17 }
  0x70   : > { %676 = vmatprep.subr.mxu1 %v917_v0 }
  0x71   : > { %677 = vmatpush3.msra.mxu1 %v386_v18 }
  0x72   : > { %678 = vmatprep.subr.mxu1 %v917_v0 }
  0x73   : > { %679 = vmatpush3.msra.mxu1 %v385_v19 }
  0x74   : > { %680 = vmatprep.subr.mxu1 %v917_v0 }
  0x75   : > { %681 = vmatpush3.msra.mxu1 %v384_v20 }
  0x76   : > { %682 = vmatprep.subr.mxu1 %v917_v0 }
  0x77   : > { %683 = vmatpush3.msra.mxu1 %v383_v21 }
 0x120   : > { %v378_v23 = vpop.f32.mrf.mxu0 }
 0x121   : > { %v379_v24 = vadd.f32 %v611_v22, %v378_v23 }
 0x122   : > { %v651_v25 = vpop.f32.mrf.mxu0 }
 0x123   : > { %v382_v26 = vmax.f32 %v379_v24, 0.0 }
 0x125   : > { %685 = vmatmul.mubr.f32.vlgmr.msra.gmra.mxu1 %v382_v26 }
 0x1e5   : > { %v472_v28 = vpop.f32.mrf.mxu1 }
 0x1e6   : > { %v473_v29 = vadd.f32 %v613_v27, %v472_v28 }
 0x1e7   : > { %v686_v30 = vpop.f32.mrf.mxu1 }
 0x1e8   : > { %v476_v32 = vmax.f32 %v473_v29, 0.0 }
 0x1ea   : > { %v484_v33 = vadd.f32 %v614_v31, %v476_v32 }
 0x1ec   : > { %485 = vmax.xlane.f32.xlu0 %v484_v33 }
 0x275   : > { %v486_v34 = vpop.xlane.xlu0 %485 }
 0x276   : > { %v487_v35 = vsub.f32 %v484_v33, %v486_v34 }
 0x278   : > { %v488_v36 = vmul.f32 1.442695, %v487_v35 }
 0x27a   : > { %758 = vpow2.f32 %v488_v36 }
 0x287   : > { %v759_v37 = vpop.eup %758 }
 0x288   : > { %490 = vadd.xlane.f32.xlu0 %v759_v37 }
 0x311   : > { %v491_v38 = vpop.xlane.xlu0 %490 }
 0x312   : > { %760 = vlog2.f32 %v491_v38 }
 0x31f   : > { %v761_v39 = vpop.eup %760 }
 0x320   : > { %v493_v40 = vmul.f32 0.6931472, %v761_v39 }
 0x322   : > { %v494_v41 = vsub.f32 %v487_v35, %v493_v40 }
 0x324   : > { %495 = vst [vmem:[%s295_s11] sm:$0xff] %v494_v41 }
 0x325   : > { %855 = shalt.err (!%p852_p9)
}
 0x326   : > { %s856_s20 = scalar_lea.hbm %s508_s14, 128  ;;  %s860_s15 = scalar_lea.hbm %s1161_s6, 256 }
 0x327   : > { %p857_p13 = scmp.ne.s32.totalorder %s508_s14, %s856_s20  ;;  %p861_p4 = scmp.lt.s32.totalorder %s508_s14, %s1161_s6 }
 0x328   : > { %p862_p8 = scmp.lt.s32.totalorder %s860_s15, %s856_s20 }
 0x329   : > { %p858_p5 = pnand %p857_p13, %p1179_p0 }
 0x32a   : > { %p863_p3 = por %p862_p8, %p861_p4 }
 0x32b   : > { %p859_p10 = pneg %p858_p5 }
 0x32d   : > { %p864_p11 = pnand %p863_p3, %p859_p10 }
 0x32f   : > { %867 = shalt.err (!%p864_p11)
}
 0x330   : > { %697 = dma.vmem_to_hbm [thread:$0]  (%p1179_p0), %s511_s9, 128, %s508_s14, %s497_s26  }
 0x331 PF: > { %s522_s10 = sand.u32 1, %s898_s21   ;;  %p1180_p1 = scmp.ne.s32.totalorder %s1168_s28, 0 }
 0x332   : > { %p1181_p2 = scmp.ge.s32.totalorder %s910_s24, 2  ;;  %s523_s11 = scalar_lea.sflag [#allocation4], %s522_s10 }
 0x334   : > { %p711_p6 = pnand %p1181_p2, %p1180_p1 }
 0x336   : > { %p712_p12 = pneg %p711_p6 }
 0x338   : > { %893 = dma.done.wait (%p712_p12), %s523_s11, 128  }
 0x339   : > { %895 = vsyncadd (%p712_p12), %s523_s11, 4294967168  ;;  %p20_p7 = scmp.ge.s32.totalorder %s1027_s19, 4   ;;  %s1182_s21 = smov %s902_s22 }
 0x33a   : > { %s1183_s22 = smov %s906_s23  ;;  %s1184_s23 = smov %s1043_s7 }
 0x33b   : > { %s1185_s24 = smov %s1027_s19  ;;  %22 = sbr.rel (!%p20_p7) target bundleno = 8 (0x8), region = 97 }
 0x340   :  { %528 = vsyncpa [#allocation3], 1 }
 0x341   :  { %530 = vsyncpa [#allocation3 + $0x1], 1 }
 0x342   :  { %531 = vsyncpa [#allocation6], 1 }
 0x343   :  { %532 = vsyncpa [#allocation4], 1 }
 0x344   :  { %534 = vsyncpa [#allocation4 + $0x1], 1 }

</bundles_post_ra>
